<compile_context>
chip_gen: v5e
topology: v5e:2x2
jax: 0.10.0
libtpu: 0.0.40
codegen_flags: <defaults>
</compile_context>

<pallas_src>
import functools

import jax
import jax.numpy as jnp
from jax.experimental import pallas as pl
from jax.experimental.pallas import tpu as pltpu


def _round_up(x, m):
    return ((x + m - 1) // m) * m


def _block_diag(a, b):
    m, n = a.shape
    p, q = b.shape
    top = jnp.concatenate([a, jnp.zeros((m, q), a.dtype)], axis=1)
    bot = jnp.concatenate([jnp.zeros((p, n), b.dtype), b], axis=1)
    return jnp.concatenate([top, bot], axis=0)


# ----------------------------------------------------------------------------
# Kernel: one grid step == one block of T_blk timesteps.
# ----------------------------------------------------------------------------
def encoder_kernel(
    x_ref,                         # (T_blk*Bp, I)     flattened block of inputs
    space0_ref,                    # (Bp, slab_w)      initial space (zero-padded)
    w0_ref, b0_ref, a0_ref,        # (I, 2Hd), (1, 2Hd), (1, 2Hd)
    w1_ref, b1_ref, a1_ref,        # (2Hd, 2Hd), (1, 2Hd), (1, 2Hd)
    w2_ref, b2_ref, a2_ref,        # (2Hd, slab_w), (1, slab_w), (1, slab_w)
    perm_ref,                      # (slab_w, slab_w)  lanes: delta = mt @ perm
    mt_ref,                        # (T_blk*Bp, slab_w) out: [mark | tick | pad]
    space_ref,                     # (T_blk*Bp, slab_w) out: [space | pad]
    space_sc,                      # (Bp, slab_w)       VMEM scratch, persists over grid
    *, T_blk, Bp,
):
    f32 = jnp.float32

    @pl.when(pl.program_id(0) == 0)
    def _():
        space_sc[...] = space0_ref[...]

    # --- mark/tick nets for the whole block: 3 wide MXU dots (M = T_blk*Bp) ---
    x = x_ref[...]
    h = jnp.dot(x, w0_ref[...], preferred_element_type=f32) + b0_ref[...]
    h = jnp.where(h >= 0, h, a0_ref[...] * h)                 # PReLU (per-column slope)

    h = jnp.dot(h, w1_ref[...], preferred_element_type=f32) + b1_ref[...]
    h = jnp.where(h >= 0, h, a1_ref[...] * h)

    mt = jnp.dot(h, w2_ref[...], preferred_element_type=f32) + b2_ref[...]
    mt = jnp.where(mt >= 0, mt, a2_ref[...] * mt)             # (T_blk*Bp, slab_w)

    mt_ref[...] = mt                                          # one lane-dense store

    # Lane-aligned (mark - tick) for every timestep in the block: tiny MXU dot
    # with a constant +1/-1 selection matrix (exact in f32, keeps pad lanes 0).
    delta = jnp.dot(mt, perm_ref[...], preferred_element_type=f32)

    # --- serial stigmergic-space scan (VPU elementwise only) ---
    space = space_sc[...]
    for t in range(T_blk):
        # TODO(synk): BaseLayer.clamp definition not provided in the reference;
        # assuming it clamps the stigmergic space to [0, 1].
        space = jnp.clip(space + delta[t * Bp:(t + 1) * Bp, :], 0.0, 1.0)
        space_ref[pl.ds(t * Bp, Bp), :] = space
    space_sc[...] = space


# ----------------------------------------------------------------------------
# Wrapper
# ----------------------------------------------------------------------------
def encoder_forward(params, x_seq, recurrent, space0, *, t_blk=16):
    """Fused EncoderRNN forward over a whole sequence.

    x_seq:     (T, B, I) input sequence
    recurrent: (1, S)    SRNN_Encoder recurrent state (constant within forward)
    space0:    (S,) or (1, S) initial stigmergic space
    returns:   (space, mark, tick), each (T, B, S)
    """
    f32 = jnp.float32
    T, B, I = x_seq.shape
    S = params["wnm"].shape[0]
    Hd = params["wm1"].shape[0]

    # ---- fold normalization layers + constant recurrent into first-layer bias ----
    nm = recurrent @ params["wnm"] + params["bnm"]                  # (1, S)
    nt = recurrent @ params["wnt"] + params["bnt"]
    b0m = nm @ params["wm0r"] + params["bm0"]                       # (1, Hd)
    b0t = nt @ params["wt0r"] + params["bt0"]

    # ---- fuse mark/tick nets into wide (block-diagonal) matmuls ----
    w0 = jnp.concatenate([params["wm0x"], params["wt0x"]], axis=1)  # (I, 2Hd)
    b0 = jnp.concatenate([b0m, b0t], axis=1)                        # (1, 2Hd)
    w1 = _block_diag(params["wm1"], params["wt1"])                  # (2Hd, 2Hd)
    b1 = jnp.concatenate([params["bm1"], params["bt1"]], axis=1)
    w2 = _block_diag(params["wm2"], params["wt2"])                  # (2Hd, 2S)
    b2 = jnp.concatenate([params["bm2"], params["bt2"]], axis=1)

    a = params["prelu"]                                             # [m0,m1,m2,t0,t1,t2]
    a0 = jnp.concatenate([jnp.full((1, Hd), a[0], f32), jnp.full((1, Hd), a[3], f32)], axis=1)
    a1 = jnp.concatenate([jnp.full((1, Hd), a[1], f32), jnp.full((1, Hd), a[4], f32)], axis=1)
    a2 = jnp.concatenate([jnp.full((1, S), a[2], f32), jnp.full((1, S), a[5], f32)], axis=1)

    # ---- lane-dense slab: pad last-layer columns to a multiple of 128 ----
    slab_w = _round_up(2 * S, 128)
    pad_c = slab_w - 2 * S
    w2 = jnp.pad(w2, ((0, 0), (0, pad_c)))
    b2 = jnp.pad(b2, ((0, 0), (0, pad_c)))
    a2 = jnp.pad(a2, ((0, 0), (0, pad_c)))

    # delta = mt @ perm puts (mark - tick) in lanes [0, S), zeros elsewhere.
    idx = jnp.arange(S)
    perm = jnp.zeros((slab_w, slab_w), f32)
    perm = perm.at[idx, idx].set(1.0).at[idx + S, idx].set(-1.0)

    # ---- pad batch to full sublanes and time to a block multiple ----
    Bp = max(8, _round_up(B, 8))
    T_blk = max(1, min(t_blk, T))
    Tp = _round_up(T, T_blk)
    x_p = x_seq.astype(f32)
    if Bp != B or Tp != T:
        x_p = jnp.pad(x_p, ((0, Tp - T), (0, Bp - B), (0, 0)))
    x_flat = x_p.reshape(Tp * Bp, I)

    space0_full = jnp.zeros((Bp, slab_w), f32).at[:, :S].set(
        jnp.broadcast_to(jnp.reshape(jnp.asarray(space0, f32), (1, S)), (Bp, S)))

    n_blocks = Tp // T_blk
    M_blk = T_blk * Bp

    grid_spec = pltpu.PrefetchScalarGridSpec(
        num_scalar_prefetch=0,
        grid=(n_blocks,),
        in_specs=[
            pl.BlockSpec((M_blk, I), lambda tb: (tb, 0)),           # per-block inputs
            pl.BlockSpec((Bp, slab_w), lambda tb: (0, 0)),          # initial space
            pl.BlockSpec((I, 2 * Hd), lambda tb: (0, 0)),
            pl.BlockSpec((1, 2 * Hd), lambda tb: (0, 0)),
            pl.BlockSpec((1, 2 * Hd), lambda tb: (0, 0)),
            pl.BlockSpec((2 * Hd, 2 * Hd), lambda tb: (0, 0)),
            pl.BlockSpec((1, 2 * Hd), lambda tb: (0, 0)),
            pl.BlockSpec((1, 2 * Hd), lambda tb: (0, 0)),
            pl.BlockSpec((2 * Hd, slab_w), lambda tb: (0, 0)),
            pl.BlockSpec((1, slab_w), lambda tb: (0, 0)),
            pl.BlockSpec((1, slab_w), lambda tb: (0, 0)),
            pl.BlockSpec((slab_w, slab_w), lambda tb: (0, 0)),
        ],
        out_specs=[
            pl.BlockSpec((M_blk, slab_w), lambda tb: (tb, 0)),      # [mark|tick|pad]
            pl.BlockSpec((M_blk, slab_w), lambda tb: (tb, 0)),      # [space|pad]
        ],
        scratch_shapes=[pltpu.VMEM((Bp, slab_w), f32)],             # resident space state
    )

    flops = 2 * Tp * Bp * (I * 2 * Hd + (2 * Hd) ** 2 + 2 * Hd * slab_w + slab_w * slab_w)
    bytes_accessed = 4 * (Tp * Bp * (I + 2 * slab_w)
                          + I * 2 * Hd + (2 * Hd) ** 2 + 2 * Hd * slab_w
                          + slab_w * slab_w + Bp * slab_w)
    cost = pl.CostEstimate(flops=flops, transcendentals=0, bytes_accessed=bytes_accessed)

    kernel = functools.partial(encoder_kernel, T_blk=T_blk, Bp=Bp)

    mt_out, space_out = pl.pallas_call(
        kernel,
        out_shape=(jax.ShapeDtypeStruct((Tp * Bp, slab_w), f32),
                   jax.ShapeDtypeStruct((Tp * Bp, slab_w), f32)),
        grid_spec=grid_spec,
        compiler_params=pltpu.CompilerParams(
            dimension_semantics=("arbitrary",)),                    # space carried across blocks
        cost_estimate=cost,
    )(x_flat, space0_full, w0, b0, a0, w1, b1, a1, w2, b2, a2, perm)

    mt_out = mt_out.reshape(Tp, Bp, slab_w)
    space_out = space_out.reshape(Tp, Bp, slab_w)
    space = space_out[:T, :B, :S]
    mark = mt_out[:T, :B, :S]
    tick = mt_out[:T, :B, S:2 * S]
    return space, mark, tick


# ----------------------------------------------------------------------------
# Parameters (PyTorch-equivalent shapes, stored as (in, out))
# ----------------------------------------------------------------------------
def make_params(key, input_size, output_size, hidden_size):
    I, S, Hd = input_size, output_size, hidden_size
    ks = iter(jax.random.split(key, 16))

    def lin(k, fan_in, fan_out):
        kw, kb = jax.random.split(k)
        scale = 1.0 / jnp.sqrt(fan_in)
        w = jax.random.uniform(kw, (fan_in, fan_out), jnp.float32, -scale, scale)
        b = jax.random.uniform(kb, (1, fan_out), jnp.float32, -scale, scale)
        return w, b

    p = {}
    # normalization layers (S -> S)
    p["wnm"], p["bnm"] = lin(next(ks), S, S)
    p["wnt"], p["bnt"] = lin(next(ks), S, S)
    # mark_net: Linear(I+S,Hd)+PReLU, Linear(Hd,Hd)+PReLU, Linear(Hd,S)+PReLU
    wm0, p["bm0"] = lin(next(ks), I + S, Hd)
    p["wm0x"], p["wm0r"] = wm0[:I], wm0[I:]
    p["wm1"], p["bm1"] = lin(next(ks), Hd, Hd)
    p["wm2"], p["bm2"] = lin(next(ks), Hd, S)
    # tick_net: same architecture
    wt0, p["bt0"] = lin(next(ks), I + S, Hd)
    p["wt0x"], p["wt0r"] = wt0[:I], wt0[I:]
    p["wt1"], p["bt1"] = lin(next(ks), Hd, Hd)
    p["wt2"], p["bt2"] = lin(next(ks), Hd, S)
    # PReLU slopes (PyTorch default 0.25): [mark0, mark1, mark2, tick0, tick1, tick2]
    p["prelu"] = jnp.full((6,), 0.25, jnp.float32)
    return p


# ----------------------------------------------------------------------------
# Plain-JAX reference mirroring the PyTorch module, stepped over the sequence
# ----------------------------------------------------------------------------
def reference_forward(p, x_seq, recurrent, space0):
    def prelu(x, alpha):
        return jnp.where(x >= 0, x, alpha * x)

    T, B, I = x_seq.shape
    S = p["wnm"].shape[0]
    a = p["prelu"]
    wm0 = jnp.concatenate([p["wm0x"], p["wm0r"]], axis=0)
    wt0 = jnp.concatenate([p["wt0x"], p["wt0r"]], axis=0)
    nm = recurrent @ p["wnm"] + p["bnm"]          # recurrent is constant in forward
    nt = recurrent @ p["wnt"] + p["bnt"]

    def step(space, x):
        in_mark = jnp.concatenate([x, jnp.broadcast_to(nm, (B, S))], axis=1)
        in_tick = jnp.concatenate([x, jnp.broadcast_to(nt, (B, S))], axis=1)
        h = prelu(in_mark @ wm0 + p["bm0"], a[0])
        h = prelu(h @ p["wm1"] + p["bm1"], a[1])
        mark = prelu(h @ p["wm2"] + p["bm2"], a[2])
        g = prelu(in_tick @ wt0 + p["bt0"], a[3])
        g = prelu(g @ p["wt1"] + p["bt1"], a[4])
        tick = prelu(g @ p["wt2"] + p["bt2"], a[5])
        space = jnp.clip(space + mark - tick, 0.0, 1.0)
        return space, (space, mark, tick)

    space_init = jnp.broadcast_to(jnp.reshape(space0, (1, S)), (B, S))
    _, (spaces, marks, ticks) = jax.lax.scan(step, space_init, x_seq)
    return spaces, marks, ticks


if __name__ == "__main__":
    T, B, INPUT, OUTPUT, HIDDEN = 8, 8, 16, 32, 32

    key = jax.random.PRNGKey(0)
    kp, kx = jax.random.split(key)
    params = make_params(kp, INPUT, OUTPUT, HIDDEN)

    x_seq = jax.random.normal(kx, (T, B, INPUT), jnp.float32)
    recurrent = jnp.ones((1, OUTPUT), jnp.float32)   # init_recurrent (torch.ones)
    space0 = jnp.zeros((OUTPUT,), jnp.float32)       # init_space (torch.zeros)

    out = encoder_forward(params, x_seq, recurrent, space0)
    out = jax.block_until_ready(out)

    ref = reference_forward(params, x_seq, recurrent, space0)
    for name, got, want in zip(("space", "mark", "tick"), out, ref):
        assert got.shape == want.shape and got.dtype == want.dtype, f"shape/dtype: {name}"
        assert jnp.allclose(got, want, atol=1e-4, rtol=1e-4), f"mismatch vs reference: {name}"

    print("KERNEL_OK")
</pallas_src>

<mosaic_0001>
module attributes {stable_mosaic.version = 11 : i64} {
  func.func @encoder_kernel(%arg0: i32, %arg1: memref<64x16xf32, #tpu.memory_space<vmem>>, %arg2: memref<8x128xf32, #tpu.memory_space<vmem>>, %arg3: memref<16x64xf32, #tpu.memory_space<vmem>>, %arg4: memref<1x64xf32, #tpu.memory_space<vmem>>, %arg5: memref<1x64xf32, #tpu.memory_space<vmem>>, %arg6: memref<64x64xf32, #tpu.memory_space<vmem>>, %arg7: memref<1x64xf32, #tpu.memory_space<vmem>>, %arg8: memref<1x64xf32, #tpu.memory_space<vmem>>, %arg9: memref<64x128xf32, #tpu.memory_space<vmem>>, %arg10: memref<1x128xf32, #tpu.memory_space<vmem>>, %arg11: memref<1x128xf32, #tpu.memory_space<vmem>>, %arg12: memref<128x128xf32, #tpu.memory_space<vmem>>, %arg13: memref<64x128xf32, #tpu.memory_space<vmem>>, %arg14: memref<64x128xf32, #tpu.memory_space<vmem>>, %arg15: memref<8x128xf32, #tpu.memory_space<vmem>>) attributes {dimension_semantics = [#tpu.dimension_semantics<arbitrary>], iteration_bounds = array<i64: 1>, scalar_prefetch = 0 : i64, scratch_operands = 1 : i64, tpu.core_type = #tpu.core_type<tc>, window_params = [{transform_indices = @transform_0, window_bounds = array<i64: 64, 16>}, {pipeline_mode = #tpu.pipeline_mode<synchronous>, transform_indices = @transform_1, window_bounds = array<i64: 8, 128>}, {pipeline_mode = #tpu.pipeline_mode<synchronous>, transform_indices = @transform_2, window_bounds = array<i64: 16, 64>}, {pipeline_mode = #tpu.pipeline_mode<synchronous>, transform_indices = @transform_3, window_bounds = array<i64: 1, 64>}, {pipeline_mode = #tpu.pipeline_mode<synchronous>, transform_indices = @transform_4, window_bounds = array<i64: 1, 64>}, {pipeline_mode = #tpu.pipeline_mode<synchronous>, transform_indices = @transform_5, window_bounds = array<i64: 64, 64>}, {pipeline_mode = #tpu.pipeline_mode<synchronous>, transform_indices = @transform_6, window_bounds = array<i64: 1, 64>}, {pipeline_mode = #tpu.pipeline_mode<synchronous>, transform_indices = @transform_7, window_bounds = array<i64: 1, 64>}, {pipeline_mode = #tpu.pipeline_mode<synchronous>, transform_indices = @transform_8, window_bounds = array<i64: 64, 128>}, {pipeline_mode = #tpu.pipeline_mode<synchronous>, transform_indices = @transform_9, window_bounds = array<i64: 1, 128>}, {pipeline_mode = #tpu.pipeline_mode<synchronous>, transform_indices = @transform_10, window_bounds = array<i64: 1, 128>}, {pipeline_mode = #tpu.pipeline_mode<synchronous>, transform_indices = @transform_11, window_bounds = array<i64: 128, 128>}, {transform_indices = @transform_12, window_bounds = array<i64: 64, 128>}, {transform_indices = @transform_13, window_bounds = array<i64: 64, 128>}]} {
    %c0_i32 = arith.constant 0 : i32
    %0 = arith.cmpi eq, %arg0, %c0_i32 : i32
    %1 = arith.extui %0 : i1 to i32
    %c0_i32_0 = arith.constant 0 : i32
    %2 = arith.cmpi ne, %1, %c0_i32_0 : i32
    scf.if %2 {
      %c0_59 = arith.constant 0 : index
      %c0_60 = arith.constant 0 : index
      %98 = vector.load %arg2[%c0_59, %c0_60] : memref<8x128xf32, #tpu.memory_space<vmem>>, vector<8x128xf32>
      %c0_61 = arith.constant 0 : index
      %c0_62 = arith.constant 0 : index
      %99 = vector.load %arg15[%c0_61, %c0_62] : memref<8x128xf32, #tpu.memory_space<vmem>>, vector<8x128xf32>
      tpu.vector_store %arg15[%c0_61, %c0_62], %98 {strides = array<i32>} : memref<8x128xf32, #tpu.memory_space<vmem>>, vector<8x128xf32>,
    } else {
    }
    %c0 = arith.constant 0 : index
    %c0_1 = arith.constant 0 : index
    %3 = vector.load %arg1[%c0, %c0_1] : memref<64x16xf32, #tpu.memory_space<vmem>>, vector<64x16xf32>
    %c0_2 = arith.constant 0 : index
    %c0_3 = arith.constant 0 : index
    %4 = vector.load %arg3[%c0_2, %c0_3] : memref<16x64xf32, #tpu.memory_space<vmem>>, vector<16x64xf32>
    %cst = arith.constant dense<0.000000e+00> : vector<64x64xf32>
    %5 = tpu.matmul %3, %4, %cst {dimension_numbers = #tpu.dot_dimension_numbers<[1], [0], [0], [1], [0, 0, 1, 1], [], []>} : vector<64x16xf32>, vector<16x64xf32>, vector<64x64xf32> -> vector<64x64xf32>
    %c0_4 = arith.constant 0 : index
    %c0_5 = arith.constant 0 : index
    %6 = vector.load %arg4[%c0_4, %c0_5] : memref<1x64xf32, #tpu.memory_space<vmem>>, vector<1x64xf32>
    %7 = vector.broadcast %6 : vector<1x64xf32> to vector<64x64xf32>
    %8 = arith.addf %5, %7 : vector<64x64xf32>
    %cst_6 = arith.constant 0.000000e+00 : f32
    %9 = vector.broadcast %cst_6 : f32 to vector<64x64xf32>
    %10 = arith.cmpf oge, %8, %9 : vector<64x64xf32>
    %c0_7 = arith.constant 0 : index
    %c0_8 = arith.constant 0 : index
    %11 = vector.load %arg5[%c0_7, %c0_8] : memref<1x64xf32, #tpu.memory_space<vmem>>, vector<1x64xf32>
    %12 = vector.broadcast %11 : vector<1x64xf32> to vector<64x64xf32>
    %13 = arith.mulf %12, %8 : vector<64x64xf32>
    %14 = arith.select %10, %8, %13 : vector<64x64xi1>, vector<64x64xf32>
    %c0_9 = arith.constant 0 : index
    %c0_10 = arith.constant 0 : index
    %15 = vector.load %arg6[%c0_9, %c0_10] : memref<64x64xf32, #tpu.memory_space<vmem>>, vector<64x64xf32>
    %cst_11 = arith.constant dense<0.000000e+00> : vector<64x64xf32>
    %16 = tpu.matmul %14, %15, %cst_11 {dimension_numbers = #tpu.dot_dimension_numbers<[1], [0], [0], [1], [0, 0, 1, 1], [], []>} : vector<64x64xf32>, vector<64x64xf32>, vector<64x64xf32> -> vector<64x64xf32>
    %c0_12 = arith.constant 0 : index
    %c0_13 = arith.constant 0 : index
    %17 = vector.load %arg7[%c0_12, %c0_13] : memref<1x64xf32, #tpu.memory_space<vmem>>, vector<1x64xf32>
    %18 = vector.broadcast %17 : vector<1x64xf32> to vector<64x64xf32>
    %19 = arith.addf %16, %18 : vector<64x64xf32>
    %cst_14 = arith.constant 0.000000e+00 : f32
    %20 = vector.broadcast %cst_14 : f32 to vector<64x64xf32>
    %21 = arith.cmpf oge, %19, %20 : vector<64x64xf32>
    %c0_15 = arith.constant 0 : index
    %c0_16 = arith.constant 0 : index
    %22 = vector.load %arg8[%c0_15, %c0_16] : memref<1x64xf32, #tpu.memory_space<vmem>>, vector<1x64xf32>
    %23 = vector.broadcast %22 : vector<1x64xf32> to vector<64x64xf32>
    %24 = arith.mulf %23, %19 : vector<64x64xf32>
    %25 = arith.select %21, %19, %24 : vector<64x64xi1>, vector<64x64xf32>
    %c0_17 = arith.constant 0 : index
    %c0_18 = arith.constant 0 : index
    %26 = vector.load %arg9[%c0_17, %c0_18] : memref<64x128xf32, #tpu.memory_space<vmem>>, vector<64x128xf32>
    %cst_19 = arith.constant dense<0.000000e+00> : vector<64x128xf32>
    %27 = tpu.matmul %25, %26, %cst_19 {dimension_numbers = #tpu.dot_dimension_numbers<[1], [0], [0], [1], [0, 0, 1, 1], [], []>} : vector<64x64xf32>, vector<64x128xf32>, vector<64x128xf32> -> vector<64x128xf32>
    %c0_20 = arith.constant 0 : index
    %c0_21 = arith.constant 0 : index
    %28 = vector.load %arg10[%c0_20, %c0_21] : memref<1x128xf32, #tpu.memory_space<vmem>>, vector<1x128xf32>
    %29 = vector.broadcast %28 : vector<1x128xf32> to vector<64x128xf32>
    %30 = arith.addf %27, %29 : vector<64x128xf32>
    %cst_22 = arith.constant 0.000000e+00 : f32
    %31 = vector.broadcast %cst_22 : f32 to vector<64x128xf32>
    %32 = arith.cmpf oge, %30, %31 : vector<64x128xf32>
    %c0_23 = arith.constant 0 : index
    %c0_24 = arith.constant 0 : index
    %33 = vector.load %arg11[%c0_23, %c0_24] : memref<1x128xf32, #tpu.memory_space<vmem>>, vector<1x128xf32>
    %34 = vector.broadcast %33 : vector<1x128xf32> to vector<64x128xf32>
    %35 = arith.mulf %34, %30 : vector<64x128xf32>
    %36 = arith.select %32, %30, %35 : vector<64x128xi1>, vector<64x128xf32>
    %c0_25 = arith.constant 0 : index
    %c0_26 = arith.constant 0 : index
    %37 = vector.load %arg13[%c0_25, %c0_26] : memref<64x128xf32, #tpu.memory_space<vmem>>, vector<64x128xf32>
    tpu.vector_store %arg13[%c0_25, %c0_26], %36 {strides = array<i32>} : memref<64x128xf32, #tpu.memory_space<vmem>>, vector<64x128xf32>,
    %c0_27 = arith.constant 0 : index
    %c0_28 = arith.constant 0 : index
    %38 = vector.load %arg12[%c0_27, %c0_28] : memref<128x128xf32, #tpu.memory_space<vmem>>, vector<128x128xf32>
    %cst_29 = arith.constant dense<0.000000e+00> : vector<64x128xf32>
    %39 = tpu.matmul %36, %38, %cst_29 {dimension_numbers = #tpu.dot_dimension_numbers<[1], [0], [0], [1], [0, 0, 1, 1], [], []>} : vector<64x128xf32>, vector<128x128xf32>, vector<64x128xf32> -> vector<64x128xf32>
    %c0_30 = arith.constant 0 : index
    %c0_31 = arith.constant 0 : index
    %40 = vector.load %arg15[%c0_30, %c0_31] : memref<8x128xf32, #tpu.memory_space<vmem>>, vector<8x128xf32>
    %41 = vector.extract_strided_slice %39 {offsets = [0, 0], sizes = [8, 128], strides = [1, 1]} : vector<64x128xf32> to vector<8x128xf32>
    %42 = arith.addf %40, %41 : vector<8x128xf32>
    %cst_32 = arith.constant 0.000000e+00 : f32
    %cst_33 = arith.constant 1.000000e+00 : f32
    %43 = vector.broadcast %cst_32 : f32 to vector<8x128xf32>
    %44 = arith.maximumf %43, %42 : vector<8x128xf32>
    %45 = vector.broadcast %cst_33 : f32 to vector<8x128xf32>
    %46 = arith.minimumf %45, %44 : vector<8x128xf32>
    %c0_34 = arith.constant 0 : index
    %c0_35 = arith.constant 0 : index
    %47 = vector.load %arg14[%c0_34, %c0_35] : memref<64x128xf32, #tpu.memory_space<vmem>>, vector<8x128xf32>
    tpu.vector_store %arg14[%c0_34, %c0_35], %46 {strides = array<i32>} : memref<64x128xf32, #tpu.memory_space<vmem>>, vector<8x128xf32>,
    %48 = vector.extract_strided_slice %39 {offsets = [8, 0], sizes = [8, 128], strides = [1, 1]} : vector<64x128xf32> to vector<8x128xf32>
    %49 = arith.addf %46, %48 : vector<8x128xf32>
    %cst_36 = arith.constant 0.000000e+00 : f32
    %cst_37 = arith.constant 1.000000e+00 : f32
    %50 = vector.broadcast %cst_36 : f32 to vector<8x128xf32>
    %51 = arith.maximumf %50, %49 : vector<8x128xf32>
    %52 = vector.broadcast %cst_37 : f32 to vector<8x128xf32>
    %53 = arith.minimumf %52, %51 : vector<8x128xf32>
    %c8 = arith.constant 8 : index
    %c0_38 = arith.constant 0 : index
    %54 = vector.load %arg14[%c8, %c0_38] : memref<64x128xf32, #tpu.memory_space<vmem>>, vector<8x128xf32>
    tpu.vector_store %arg14[%c8, %c0_38], %53 {strides = array<i32>} : memref<64x128xf32, #tpu.memory_space<vmem>>, vector<8x128xf32>,
    %55 = vector.extract_strided_slice %39 {offsets = [16, 0], sizes = [8, 128], strides = [1, 1]} : vector<64x128xf32> to vector<8x128xf32>
    %56 = arith.addf %53, %55 : vector<8x128xf32>
    %cst_39 = arith.constant 0.000000e+00 : f32
    %cst_40 = arith.constant 1.000000e+00 : f32
    %57 = vector.broadcast %cst_39 : f32 to vector<8x128xf32>
    %58 = arith.maximumf %57, %56 : vector<8x128xf32>
    %59 = vector.broadcast %cst_40 : f32 to vector<8x128xf32>
    %60 = arith.minimumf %59, %58 : vector<8x128xf32>
    %c16 = arith.constant 16 : index
    %c0_41 = arith.constant 0 : index
    %61 = vector.load %arg14[%c16, %c0_41] : memref<64x128xf32, #tpu.memory_space<vmem>>, vector<8x128xf32>
    tpu.vector_store %arg14[%c16, %c0_41], %60 {strides = array<i32>} : memref<64x128xf32, #tpu.memory_space<vmem>>, vector<8x128xf32>,
    %62 = vector.extract_strided_slice %39 {offsets = [24, 0], sizes = [8, 128], strides = [1, 1]} : vector<64x128xf32> to vector<8x128xf32>
    %63 = arith.addf %60, %62 : vector<8x128xf32>
    %cst_42 = arith.constant 0.000000e+00 : f32
    %cst_43 = arith.constant 1.000000e+00 : f32
    %64 = vector.broadcast %cst_42 : f32 to vector<8x128xf32>
    %65 = arith.maximumf %64, %63 : vector<8x128xf32>
    %66 = vector.broadcast %cst_43 : f32 to vector<8x128xf32>
    %67 = arith.minimumf %66, %65 : vector<8x128xf32>
    %c24 = arith.constant 24 : index
    %c0_44 = arith.constant 0 : index
    %68 = vector.load %arg14[%c24, %c0_44] : memref<64x128xf32, #tpu.memory_space<vmem>>, vector<8x128xf32>
    tpu.vector_store %arg14[%c24, %c0_44], %67 {strides = array<i32>} : memref<64x128xf32, #tpu.memory_space<vmem>>, vector<8x128xf32>,
    %69 = vector.extract_strided_slice %39 {offsets = [32, 0], sizes = [8, 128], strides = [1, 1]} : vector<64x128xf32> to vector<8x128xf32>
    %70 = arith.addf %67, %69 : vector<8x128xf32>
    %cst_45 = arith.constant 0.000000e+00 : f32
    %cst_46 = arith.constant 1.000000e+00 : f32
    %71 = vector.broadcast %cst_45 : f32 to vector<8x128xf32>
    %72 = arith.maximumf %71, %70 : vector<8x128xf32>
    %73 = vector.broadcast %cst_46 : f32 to vector<8x128xf32>
    %74 = arith.minimumf %73, %72 : vector<8x128xf32>
    %c32 = arith.constant 32 : index
    %c0_47 = arith.constant 0 : index
    %75 = vector.load %arg14[%c32, %c0_47] : memref<64x128xf32, #tpu.memory_space<vmem>>, vector<8x128xf32>
    tpu.vector_store %arg14[%c32, %c0_47], %74 {strides = array<i32>} : memref<64x128xf32, #tpu.memory_space<vmem>>, vector<8x128xf32>,
    %76 = vector.extract_strided_slice %39 {offsets = [40, 0], sizes = [8, 128], strides = [1, 1]} : vector<64x128xf32> to vector<8x128xf32>
    %77 = arith.addf %74, %76 : vector<8x128xf32>
    %cst_48 = arith.constant 0.000000e+00 : f32
    %cst_49 = arith.constant 1.000000e+00 : f32
    %78 = vector.broadcast %cst_48 : f32 to vector<8x128xf32>
    %79 = arith.maximumf %78, %77 : vector<8x128xf32>
    %80 = vector.broadcast %cst_49 : f32 to vector<8x128xf32>
    %81 = arith.minimumf %80, %79 : vector<8x128xf32>
    %c40 = arith.constant 40 : index
    %c0_50 = arith.constant 0 : index
    %82 = vector.load %arg14[%c40, %c0_50] : memref<64x128xf32, #tpu.memory_space<vmem>>, vector<8x128xf32>
    tpu.vector_store %arg14[%c40, %c0_50], %81 {strides = array<i32>} : memref<64x128xf32, #tpu.memory_space<vmem>>, vector<8x128xf32>,
    %83 = vector.extract_strided_slice %39 {offsets = [48, 0], sizes = [8, 128], strides = [1, 1]} : vector<64x128xf32> to vector<8x128xf32>
    %84 = arith.addf %81, %83 : vector<8x128xf32>
    %cst_51 = arith.constant 0.000000e+00 : f32
    %cst_52 = arith.constant 1.000000e+00 : f32
    %85 = vector.broadcast %cst_51 : f32 to vector<8x128xf32>
    %86 = arith.maximumf %85, %84 : vector<8x128xf32>
    %87 = vector.broadcast %cst_52 : f32 to vector<8x128xf32>
    %88 = arith.minimumf %87, %86 : vector<8x128xf32>
    %c48 = arith.constant 48 : index
    %c0_53 = arith.constant 0 : index
    %89 = vector.load %arg14[%c48, %c0_53] : memref<64x128xf32, #tpu.memory_space<vmem>>, vector<8x128xf32>
    tpu.vector_store %arg14[%c48, %c0_53], %88 {strides = array<i32>} : memref<64x128xf32, #tpu.memory_space<vmem>>, vector<8x128xf32>,
    %90 = vector.extract_strided_slice %39 {offsets = [56, 0], sizes = [8, 128], strides = [1, 1]} : vector<64x128xf32> to vector<8x128xf32>
    %91 = arith.addf %88, %90 : vector<8x128xf32>
    %cst_54 = arith.constant 0.000000e+00 : f32
    %cst_55 = arith.constant 1.000000e+00 : f32
    %92 = vector.broadcast %cst_54 : f32 to vector<8x128xf32>
    %93 = arith.maximumf %92, %91 : vector<8x128xf32>
    %94 = vector.broadcast %cst_55 : f32 to vector<8x128xf32>
    %95 = arith.minimumf %94, %93 : vector<8x128xf32>
    %c56 = arith.constant 56 : index
    %c0_56 = arith.constant 0 : index
    %96 = vector.load %arg14[%c56, %c0_56] : memref<64x128xf32, #tpu.memory_space<vmem>>, vector<8x128xf32>
    tpu.vector_store %arg14[%c56, %c0_56], %95 {strides = array<i32>} : memref<64x128xf32, #tpu.memory_space<vmem>>, vector<8x128xf32>,
    %c0_57 = arith.constant 0 : index
    %c0_58 = arith.constant 0 : index
    %97 = vector.load %arg15[%c0_57, %c0_58] : memref<8x128xf32, #tpu.memory_space<vmem>>, vector<8x128xf32>
    tpu.vector_store %arg15[%c0_57, %c0_58], %95 {strides = array<i32>} : memref<8x128xf32, #tpu.memory_space<vmem>>, vector<8x128xf32>,
    return
  }
  func.func @transform_0(%arg0: i32) -> (i32, i32) {
    %c0_i32 = arith.constant 0 : i32
    %c0_i32_0 = arith.constant 0 : i32
    return %arg0, %c0_i32 : i32, i32
  }
  func.func @transform_1(%arg0: i32) -> (i32, i32) {
    %c0_i32 = arith.constant 0 : i32
    %c0_i32_0 = arith.constant 0 : i32
    %c0_i32_1 = arith.constant 0 : i32
    return %c0_i32, %c0_i32_0 : i32, i32
  }
  func.func @transform_2(%arg0: i32) -> (i32, i32) {
    %c0_i32 = arith.constant 0 : i32
    %c0_i32_0 = arith.constant 0 : i32
    %c0_i32_1 = arith.constant 0 : i32
    return %c0_i32, %c0_i32_0 : i32, i32
  }
  func.func @transform_3(%arg0: i32) -> (i32, i32) {
    %c0_i32 = arith.constant 0 : i32
    %c0_i32_0 = arith.constant 0 : i32
    %c0_i32_1 = arith.constant 0 : i32
    return %c0_i32, %c0_i32_0 : i32, i32
  }
  func.func @transform_4(%arg0: i32) -> (i32, i32) {
    %c0_i32 = arith.constant 0 : i32
    %c0_i32_0 = arith.constant 0 : i32
    %c0_i32_1 = arith.constant 0 : i32
    return %c0_i32, %c0_i32_0 : i32, i32
  }
  func.func @transform_5(%arg0: i32) -> (i32, i32) {
    %c0_i32 = arith.constant 0 : i32
    %c0_i32_0 = arith.constant 0 : i32
    %c0_i32_1 = arith.constant 0 : i32
    return %c0_i32, %c0_i32_0 : i32, i32
  }
  func.func @transform_6(%arg0: i32) -> (i32, i32) {
    %c0_i32 = arith.constant 0 : i32
    %c0_i32_0 = arith.constant 0 : i32
    %c0_i32_1 = arith.constant 0 : i32
    return %c0_i32, %c0_i32_0 : i32, i32
  }
  func.func @transform_7(%arg0: i32) -> (i32, i32) {
    %c0_i32 = arith.constant 0 : i32
    %c0_i32_0 = arith.constant 0 : i32
    %c0_i32_1 = arith.constant 0 : i32
    return %c0_i32, %c0_i32_0 : i32, i32
  }
  func.func @transform_8(%arg0: i32) -> (i32, i32) {
    %c0_i32 = arith.constant 0 : i32
    %c0_i32_0 = arith.constant 0 : i32
    %c0_i32_1 = arith.constant 0 : i32
    return %c0_i32, %c0_i32_0 : i32, i32
  }
  func.func @transform_9(%arg0: i32) -> (i32, i32) {
    %c0_i32 = arith.constant 0 : i32
    %c0_i32_0 = arith.constant 0 : i32
    %c0_i32_1 = arith.constant 0 : i32
    return %c0_i32, %c0_i32_0 : i32, i32
  }
  func.func @transform_10(%arg0: i32) -> (i32, i32) {
    %c0_i32 = arith.constant 0 : i32
    %c0_i32_0 = arith.constant 0 : i32
    %c0_i32_1 = arith.constant 0 : i32
    return %c0_i32, %c0_i32_0 : i32, i32
  }
  func.func @transform_11(%arg0: i32) -> (i32, i32) {
    %c0_i32 = arith.constant 0 : i32
    %c0_i32_0 = arith.constant 0 : i32
    %c0_i32_1 = arith.constant 0 : i32
    return %c0_i32, %c0_i32_0 : i32, i32
  }
  func.func @transform_12(%arg0: i32) -> (i32, i32) {
    %c0_i32 = arith.constant 0 : i32
    %c0_i32_0 = arith.constant 0 : i32
    return %arg0, %c0_i32 : i32, i32
  }
  func.func @transform_13(%arg0: i32) -> (i32, i32) {
    %c0_i32 = arith.constant 0 : i32
    %c0_i32_0 = arith.constant 0 : i32
    return %arg0, %c0_i32 : i32, i32
  }
}

</mosaic_0001>

<bundles_post_ra>
// kernel: tpu_custom_call.1
= control target key start
LH: loop header
LB: loop body
LE: loop exit
PB: predicated region body
PF: predicated region fallthrough
CT: control target
= control target key end

     0   :  { %19 = vsyncpa [#allocation4], 0  ;;  %s953_s0 = inlined_call_operand.vmem [shape: f32[64,16], index: 0, kind: input, shape index: {}]   ;;  %s954_s1 = inlined_call_operand.hbm [shape: f32[8,128], index: 1, kind: input, shape index: {}]   ;;  %s955_s2 = inlined_call_operand.vmem [shape: f32[16,64], index: 2, kind: input, shape index: {}]   ;;  %s956_s3 = inlined_call_operand.vmem [shape: f32[1,64], index: 3, kind: input, shape index: {}]   ;;  %s957_s4 = inlined_call_operand.vmem [shape: f32[1,64], index: 4, kind: input, shape index: {}]   ;;  %s958_s5 = inlined_call_operand.vmem [shape: f32[64,64], index: 5, kind: input, shape index: {}]   ;;  %s959_s6 = inlined_call_operand.vmem [shape: f32[1,64], index: 6, kind: input, shape index: {}]   ;;  %s960_s7 = inlined_call_operand.vmem [shape: f32[1,64], index: 7, kind: input, shape index: {}]   ;;  %s961_s8 = inlined_call_operand.hbm [shape: f32[64,128], index: 8, kind: input, shape index: {}]   ;;  %s962_s9 = inlined_call_operand.vmem [shape: f32[1,128], index: 9, kind: input, shape index: {}]   ;;  %s963_s10 = inlined_call_operand.vmem [shape: f32[1,128], index: 10, kind: input, shape index: {}]   ;;  %s964_s11 = inlined_call_operand.hbm [shape: f32[128,128], index: 11, kind: input, shape index: {}]   ;;  %s965_s12 = inlined_call_operand.hbm [shape: f32[64,128], index: 12, kind: output, shape index: {0}]   ;;  %s966_s13 = inlined_call_operand.hbm [shape: f32[64,128], index: 13, kind: output, shape index: {1}]  }
   0x1   :  { %20 = vsyncpa [#allocation7], 0 }
   0x2   :  { %21 = vsyncpa [#allocation5], 0  ;;  %s52_s27 = sshll.u32 %s961_s8, 4  ;;  %s53_s27 = int_to_ptr.hbm [resolvable:$true] %s52_s27 }
   0x3   :  { %22 = vsyncpa [#allocation11], 0  ;;  %s733_s28 = smov [#allocation6]   ;;  %s30_s15 = sshll.u32 %s954_s1, 4  ;;  %s31_s15 = int_to_ptr.hbm [resolvable:$true] %s30_s15 }
   0x4   :  { %s54_s29 = sshll.u32 %s733_s28, 4  ;;  %s734_s16 = smov 128   ;;  %s55_s29 = int_to_ptr.vmem [resolvable:$true] %s54_s29 }
   0x5   :  { %s735_s17 = smov 8   ;;  %s736_s18 = smov [#allocation3]  }
   0x6   :  { %60 = dma.hbm_to_vmem [thread:$0]  %s53_s27, 1024, %s55_s29, [#allocation7], %s734_s16, %s734_s16, %s735_s17  }
   0x7   :  { %s32_s19 = sshll.u32 %s736_s18, 4  ;;  %s69_s21 = sshll.u32 %s964_s11, 4  ;;  %s33_s19 = int_to_ptr.vmem [resolvable:$true] %s32_s19  ;;  %s70_s21 = int_to_ptr.hbm [resolvable:$true] %s69_s21 }
   0x8   :  { %35 = dma.hbm_to_vmem [thread:$0]  %s31_s15, 128, %s33_s19, [#allocation4]  }
   0x9   :  { %s737_s22 = smov [#allocation8]  }
   0xa   :  { %s71_s23 = sshll.u32 %s737_s22, 4  ;;  %s72_s23 = int_to_ptr.vmem [resolvable:$true] %s71_s23 }
   0xb   :  { %77 = dma.hbm_to_vmem [thread:$0]  %s70_s21, 2048, %s72_s23, [#allocation7], %s734_s16, %s734_s16, %s735_s17  }
   0xc   :  { %725 = dma.done.wait [#allocation4], 128  }
   0xd   :  { %726 = vsyncadd [#allocation4], 4294967168 }
   0xe   :  { %727 = dma.done.wait [#allocation7], 3072  }
   0xf   :  { %728 = vsyncadd [#allocation7], 4294964224  ;;  %v105_v0 = vld [vmem:[%s955_s2 + $0x8] sm:$0xff]  ;;  %v104_v1 = vld [vmem:[%s955_s2] sm:$0xff]  ;;  %vm110_vm0 = vcmask 130048   ;;  %vm216_vm2 = vcmask 523264  }
  0x10   :  { %149 = vmatpush.msra.mxu0 %v105_v0  ;;  %v96_v2 = vld [vmem:[%s953_s0] sm:$0xff]  ;;  %v97_v3 = vld [vmem:[%s953_s0 + $0x8] sm:$0xff]  ;;  %v98_v4 = vld [vmem:[%s953_s0 + $0x10] sm:$0xff]  ;;  %s520_s28 = sshll.u32 %s965_s12, 4  ;;  %s739_s12 = smov [#allocation10]   ;;  %s521_s28 = int_to_ptr.hbm [resolvable:$true] %s520_s28 }
  0x11   :  { %v99_v5 = vld [vmem:[%s953_s0 + $0x18] sm:$0xff]  ;;  %v210_v7 = vld [vmem:[%s958_s5 + $0x30] sm:$0xff]  ;;  %v209_v8 = vld [vmem:[%s958_s5 + $0x28] sm:$0xff]  ;;  %s531_s29 = sshll.u32 %s739_s12, 4  ;;  %s533_s2 = sshll.u32 %s966_s13, 4  ;;  %s532_s29 = int_to_ptr.vmem [resolvable:$true] %s531_s29  ;;  %s534_s2 = int_to_ptr.hbm [resolvable:$true] %s533_s2 }
  0x12   :  { %150 = vmatpush.msra.mxu0 %v104_v1  ;;  %v211_v6 = vld [vmem:[%s958_s5 + $0x38] sm:$0xff]  ;;  %v208_v9 = vld [vmem:[%s958_s5 + $0x20] sm:$0xff]  ;;  %v101_v12 = vld [vmem:[%s953_s0 + $0x28] sm:$0xff] }
  0x13   :  { %552 = vmatmul.msk.f32.vlgmr.msra.gmra.mxu0 %vm110_vm0, %v96_v2  ;;  %249 = vmatpush.msra.mxu1 %v211_v6  ;;  %v100_v10 = vld [vmem:[%s953_s0 + $0x20] sm:$0xff]  ;;  %v207_v11 = vld [vmem:[%s958_s5 + $0x18] sm:$0xff]  ;;  %v102_v13 = vld [vmem:[%s953_s0 + $0x30] sm:$0xff] }
  0x14   :  { %v103_v14 = vld [vmem:[%s953_s0 + $0x38] sm:$0xff]  ;;  %v206_v15 = vld [vmem:[%s958_s5 + $0x10] sm:$0xff]  ;;  %v205_v16 = vld [vmem:[%s958_s5 + $0x8] sm:$0xff] }
  0x15   :  { %250 = vmatpush.msra.mxu1 %v210_v7  ;;  %v204_v17 = vld [vmem:[%s958_s5] sm:$0xff]  ;;  %v316_v37 = vld [vmem:[#allocation6 + $0x30] sm:$0xff]  ;;  %v315_v39 = vld [vmem:[#allocation6 + $0x28] sm:$0xff] }
  0x16   :  { %v599_v18 = vld [vmem:[%s956_s3] ss:$0 sm:$0xff]  ;;  %v314_v41 = vld [vmem:[#allocation6 + $0x20] sm:$0xff]  ;;  %v312_v57 = vld [vmem:[#allocation6 + $0x10] sm:$0xff] }
  0x17   :  { %251 = vmatpush.msra.mxu1 %v209_v8  ;;  %v600_v19 = vld [vmem:[%s957_s4] ss:$0 sm:$0xff]  ;;  %v311_v58 = vld [vmem:[#allocation6 + $0x8] sm:$0xff]  ;;  %v310_v59 = vld [vmem:[#allocation6] sm:$0xff] }
  0x18   :  { %v317_v36 = vld [vmem:[#allocation6 + $0x38] sm:$0xff] }
  0x19   :  { %252 = vmatpush.msra.mxu1 %v208_v9  ;;  %354 = vmatpush.msra.mxu2 %v317_v36  ;;  %v313_v43 = vld [vmem:[#allocation6 + $0x18] sm:$0xff] }
  0x1a   :  { %v904_v60 = vld [vmem:[%s959_s6] ss:$0 sm:$0xff] }
  0x1b   :  { %553 = vmatmul.msk.f32.gmra.mxu0 %vm110_vm0, %v97_v3  ;;  %253 = vmatpush.msra.mxu1 %v207_v11  ;;  %v909_v61 = vld [vmem:[%s960_s7] ss:$0 sm:$0xff] }
  0x1c   :  { %355 = vmatpush.msra.mxu2 %v316_v37  ;;  %v426_v37 = vld [vmem:[#allocation8 + $0x18] sm:$0xff] }
  0x1d   :  { %254 = vmatpush.msra.mxu1 %v206_v15  ;;  %v437_v15 = vld [vmem:[#allocation8 + $0x70] sm:$0xff] }
  0x1e   :  { %356 = vmatpush.msra.mxu2 %v315_v39 }
  0x1f   :  { %255 = vmatpush.msra.mxu1 %v205_v16 }
  0x20   :  { %357 = vmatpush.msra.mxu2 %v314_v41 }
  0x21   :  { %256 = vmatpush.msra.mxu1 %v204_v17  ;;  %v436_v17 = vld [vmem:[#allocation8 + $0x68] sm:$0xff] }
  0x22   :  { %358 = vmatpush.msra.mxu2 %v313_v43  ;;  %v425_v43 = vld [vmem:[#allocation8 + $0x10] sm:$0xff] }
  0x23   :  { %554 = vmatmul.msk.f32.gmra.mxu0 %vm110_vm0, %v98_v4 }
  0x24   :  { %359 = vmatpush.msra.mxu2 %v312_v57 }
  0x26   :  { %360 = vmatpush.msra.mxu2 %v311_v58 }
  0x28   :  { %361 = vmatpush.msra.mxu2 %v310_v59 }
  0x2b   :  { %555 = vmatmul.msk.f32.gmra.mxu0 %vm110_vm0, %v99_v5 }
  0x33   :  { %556 = vmatmul.msk.f32.gmra.mxu0 %vm110_vm0, %v100_v10 }
  0x3b   :  { %557 = vmatmul.msk.f32.gmra.mxu0 %vm110_vm0, %v101_v12 }
  0x43   :  { %558 = vmatmul.msk.f32.gmra.mxu0 %vm110_vm0, %v102_v13 }
  0x4b   :  { %559 = vmatmul.msk.f32.gmra.mxu0 %vm110_vm0, %v103_v14  ;;  %v438_v14 = vld [vmem:[#allocation8 + $0x78] sm:$0xff] }
  0x4c   :  { %439 = vmatpush.msrb.mxu0 %v438_v14  ;;  %576 = vmatpush.msra.mxu3 %v438_v14 }
  0x4e   :  { %440 = vmatpush.msrb.mxu0 %v437_v15  ;;  %577 = vmatpush.msra.mxu3 %v437_v15 }
  0x50   :  { %441 = vmatpush.msrb.mxu0 %v436_v17  ;;  %578 = vmatpush.msra.mxu3 %v436_v17 }
  0x90   :  { %v152_v20 = vpop.f32.mrf.mxu0 }
  0x91   :  { %v153_v21 = vadd.f32 %v599_v18, %v152_v20 }
  0x93   :  { %v188_v22 = vmul.f32 %v600_v19, %v153_v21  ;;  %vm176_vm1 = vcmp.ge.f32.partialorder %v153_v21, 0.0 }
  0x95   :  { %v196_v23 = vsel %vm176_vm1, %v153_v21, %v188_v22  ;;  %v434_v21 = vld [vmem:[#allocation8 + $0x58] sm:$0xff] }
  0x96   :  { %560 = vmatmul.msk.f32.vlgmr.msra.gmra.mxu1 %vm216_vm2, %v196_v23  ;;  %v433_v23 = vld [vmem:[#allocation8 + $0x50] sm:$0xff] }
  0x98   :  { %v155_v24 = vpop.f32.mrf.mxu0 }
  0x99   :  { %v156_v25 = vadd.f32 %v599_v18, %v155_v24 }
  0x9b   :  { %v189_v26 = vmul.f32 %v600_v19, %v156_v25  ;;  %vm177_vm3 = vcmp.ge.f32.partialorder %v156_v25, 0.0 }
  0x9d   :  { %v197_v27 = vsel %vm177_vm3, %v156_v25, %v189_v26  ;;  %v432_v25 = vld [vmem:[#allocation8 + $0x48] sm:$0xff] }
  0x9e   :  { %561 = vmatmul.msk.f32.gmra.mxu1 %vm216_vm2, %v197_v27  ;;  %v431_v27 = vld [vmem:[#allocation8 + $0x40] sm:$0xff] }
  0xa0   :  { %v158_v28 = vpop.f32.mrf.mxu0 }
  0xa1   :  { %v159_v29 = vadd.f32 %v599_v18, %v158_v28 }
  0xa3   :  { %v190_v30 = vmul.f32 %v600_v19, %v159_v29  ;;  %vm178_vm4 = vcmp.ge.f32.partialorder %v159_v29, 0.0 }
  0xa5   :  { %v198_v31 = vsel %vm178_vm4, %v159_v29, %v190_v30  ;;  %v430_v29 = vld [vmem:[#allocation8 + $0x38] sm:$0xff] }
  0xa6   :  { %562 = vmatmul.msk.f32.gmra.mxu1 %vm216_vm2, %v198_v31  ;;  %v429_v31 = vld [vmem:[#allocation8 + $0x30] sm:$0xff] }
  0xa8   :  { %v161_v32 = vpop.f32.mrf.mxu0 }
  0xa9   :  { %v162_v33 = vadd.f32 %v599_v18, %v161_v32 }
  0xab   :  { %v191_v34 = vmul.f32 %v600_v19, %v162_v33  ;;  %vm179_vm5 = vcmp.ge.f32.partialorder %v162_v33, 0.0 }
  0xad   :  { %v199_v35 = vsel %vm179_vm5, %v162_v33, %v191_v34  ;;  %v428_v33 = vld [vmem:[#allocation8 + $0x28] sm:$0xff] }
  0xae   :  { %563 = vmatmul.msk.f32.gmra.mxu1 %vm216_vm2, %v199_v35  ;;  %v427_v35 = vld [vmem:[#allocation8 + $0x20] sm:$0xff] }
  0xb0   :  { %v164_v38 = vpop.f32.mrf.mxu0 }
  0xb1   :  { %v165_v40 = vadd.f32 %v599_v18, %v164_v38 }
  0xb3   :  { %v192_v42 = vmul.f32 %v600_v19, %v165_v40  ;;  %vm180_vm6 = vcmp.ge.f32.partialorder %v165_v40, 0.0 }
  0xb5   :  { %v200_v44 = vsel %vm180_vm6, %v165_v40, %v192_v42 }
  0xb6   :  { %564 = vmatmul.msk.f32.gmra.mxu1 %vm216_vm2, %v200_v44  ;;  %v424_v44 = vld [vmem:[#allocation8 + $0x8] sm:$0xff] }
  0xb8   :  { %v167_v45 = vpop.f32.mrf.mxu0 }
  0xb9   :  { %v168_v46 = vadd.f32 %v599_v18, %v167_v45  ;;  %v423_v45 = vld [vmem:[#allocation8] sm:$0xff] }
  0xbb   :  { %v193_v47 = vmul.f32 %v600_v19, %v168_v46  ;;  %vm181_vm7 = vcmp.ge.f32.partialorder %v168_v46, 0.0 }
  0xbd   :  { %v201_v48 = vsel %vm181_vm7, %v168_v46, %v193_v47  ;;  %v603_v46 = vld [vmem:[%s962_s9] ss:$0 sm:$0xff]  ;;  %s738_s9 = smov [#allocation9]  }
  0xbe   :  { %565 = vmatmul.msk.f32.gmra.mxu1 %vm216_vm2, %v201_v48  ;;  %v604_v47 = vld [vmem:[%s963_s10] ss:$0 sm:$0xff]  ;;  %s518_s10 = sshll.u32 %s738_s9, 4  ;;  %s519_s10 = int_to_ptr.vmem [resolvable:$true] %s518_s10 }
  0xc0   :  { %v170_v49 = vpop.f32.mrf.mxu0 }
  0xc1   :  { %v171_v50 = vadd.f32 %v599_v18, %v170_v49 }
  0xc3   :  { %v194_v51 = vmul.f32 %v600_v19, %v171_v50  ;;  %vm182_vm8 = vcmp.ge.f32.partialorder %v171_v50, 0.0 }
  0xc5   :  { %v202_v52 = vsel %vm182_vm8, %v171_v50, %v194_v51 }
  0xc6   :  { %566 = vmatmul.msk.f32.gmra.mxu1 %vm216_vm2, %v202_v52 }
  0xc8   :  { %v173_v53 = vpop.f32.mrf.mxu0 }
  0xc9   :  { %v174_v54 = vadd.f32 %v599_v18, %v173_v53 }
  0xcb   :  { %v195_v55 = vmul.f32 %v600_v19, %v174_v54  ;;  %vm183_vm9 = vcmp.ge.f32.partialorder %v174_v54, 0.0  ;;  %v435_v19 = vld [vmem:[#allocation8 + $0x60] sm:$0xff] }
  0xcc   :  { %442 = vmatpush.msrb.mxu0 %v435_v19  ;;  %579 = vmatpush.msra.mxu3 %v435_v19 }
  0xcd   :  { %v203_v56 = vsel %vm183_vm9, %v174_v54, %v195_v55 }
  0xce   :  { %567 = vmatmul.msk.f32.gmra.mxu1 %vm216_vm2, %v203_v56  ;;  %443 = vmatpush.msrb.mxu0 %v434_v21 }
  0xcf   :  { %580 = vmatpush.msra.mxu3 %v434_v21 }
  0xd0   :  { %444 = vmatpush.msrb.mxu0 %v433_v23 }
  0xd1   :  { %581 = vmatpush.msra.mxu3 %v433_v23 }
  0xd2   :  { %445 = vmatpush.msrb.mxu0 %v432_v25 }
  0xd3   :  { %582 = vmatpush.msra.mxu3 %v432_v25 }
  0xd4   :  { %446 = vmatpush.msrb.mxu0 %v431_v27 }
  0xd5   :  { %583 = vmatpush.msra.mxu3 %v431_v27 }
  0xd6   :  { %447 = vmatpush.msrb.mxu0 %v430_v29 }
  0xd7   :  { %584 = vmatpush.msra.mxu3 %v430_v29 }
  0xd8   :  { %448 = vmatpush.msrb.mxu0 %v429_v31 }
  0xd9   :  { %585 = vmatpush.msra.mxu3 %v429_v31 }
  0xda   :  { %449 = vmatpush.msrb.mxu0 %v428_v33 }
  0xdb   :  { %586 = vmatpush.msra.mxu3 %v428_v33 }
  0xdc   :  { %450 = vmatpush.msrb.mxu0 %v427_v35 }
  0xdd   :  { %587 = vmatpush.msra.mxu3 %v427_v35 }
  0xde   :  { %451 = vmatpush.msrb.mxu0 %v426_v37 }
  0xdf   :  { %588 = vmatpush.msra.mxu3 %v426_v37 }
  0xe0   :  { %452 = vmatpush.msrb.mxu0 %v425_v43 }
  0xe1   :  { %589 = vmatpush.msra.mxu3 %v425_v43 }
  0xe2   :  { %453 = vmatpush.msrb.mxu0 %v424_v44 }
  0xe3   :  { %590 = vmatpush.msra.mxu3 %v424_v44 }
  0xe4   :  { %454 = vmatpush.msrb.mxu0 %v423_v45 }
  0xe5   :  { %591 = vmatpush.msra.mxu3 %v423_v45 }
 0x113   :  { %v258_v62 = vpop.f32.mrf.mxu1 }
 0x114   :  { %v259_v63 = vadd.f32 %v904_v60, %v258_v62 }
 0x116   :  { %v294_v0 = vmul.f32 %v909_v61, %v259_v63  ;;  %vm282_vm10 = vcmp.ge.f32.partialorder %v259_v63, 0.0 }
 0x118   :  { %v302_v1 = vsel %vm282_vm10, %v259_v63, %v294_v0 }
 0x119   :  { %568 = vmatmul.msk.f32.vlgmr.msra.gmra.mxu2 %vm216_vm2, %v302_v1 }
 0x11b   :  { %v261_v2 = vpop.f32.mrf.mxu1 }
 0x11c   :  { %v262_v3 = vadd.f32 %v904_v60, %v261_v2 }
 0x11e   :  { %v295_v4 = vmul.f32 %v909_v61, %v262_v3  ;;  %vm283_vm11 = vcmp.ge.f32.partialorder %v262_v3, 0.0 }
 0x120   :  { %v303_v5 = vsel %vm283_vm11, %v262_v3, %v295_v4 }
 0x121   :  { %569 = vmatmul.msk.f32.gmra.mxu2 %vm216_vm2, %v303_v5 }
 0x123   :  { %v264_v6 = vpop.f32.mrf.mxu1 }
 0x124   :  { %v265_v7 = vadd.f32 %v904_v60, %v264_v6 }
 0x126   :  { %v296_v8 = vmul.f32 %v909_v61, %v265_v7  ;;  %vm284_vm12 = vcmp.ge.f32.partialorder %v265_v7, 0.0 }
 0x128   :  { %v304_v9 = vsel %vm284_vm12, %v265_v7, %v296_v8 }
 0x129   :  { %570 = vmatmul.msk.f32.gmra.mxu2 %vm216_vm2, %v304_v9 }
 0x12b   :  { %v267_v10 = vpop.f32.mrf.mxu1 }
 0x12c   :  { %v268_v11 = vadd.f32 %v904_v60, %v267_v10 }
 0x12e   :  { %v297_v12 = vmul.f32 %v909_v61, %v268_v11  ;;  %vm285_vm13 = vcmp.ge.f32.partialorder %v268_v11, 0.0 }
 0x130   :  { %v305_v13 = vsel %vm285_vm13, %v268_v11, %v297_v12 }
 0x131   :  { %571 = vmatmul.msk.f32.gmra.mxu2 %vm216_vm2, %v305_v13 }
 0x133   :  { %v270_v16 = vpop.f32.mrf.mxu1 }
 0x134   :  { %v271_v18 = vadd.f32 %v904_v60, %v270_v16  ;;  %v94_v16 = vld [vmem:[#allocation3] sm:$0xff] }
 0x136   :  { %v298_v20 = vmul.f32 %v909_v61, %v271_v18  ;;  %vm286_vm14 = vcmp.ge.f32.partialorder %v271_v18, 0.0 }
 0x138   :  { %v306_v22 = vsel %vm286_vm14, %v271_v18, %v298_v20 }
 0x139   :  { %572 = vmatmul.msk.f32.gmra.mxu2 %vm216_vm2, %v306_v22 }
 0x13b   :  { %v273_v24 = vpop.f32.mrf.mxu1 }
 0x13c   :  { %v274_v26 = vadd.f32 %v904_v60, %v273_v24 }
 0x13e   :  { %v299_v28 = vmul.f32 %v909_v61, %v274_v26  ;;  %vm287_vm15 = vcmp.ge.f32.partialorder %v274_v26, 0.0 }
 0x140   :  { %v307_v30 = vsel %vm287_vm15, %v274_v26, %v299_v28 }
 0x141   :  { %573 = vmatmul.msk.f32.gmra.mxu2 %vm216_vm2, %v307_v30 }
 0x143   :  { %v276_v32 = vpop.f32.mrf.mxu1 }
 0x144   :  { %v277_v34 = vadd.f32 %v904_v60, %v276_v32 }
 0x146   :  { %v300_v36 = vmul.f32 %v909_v61, %v277_v34  ;;  %vm288_vm0 = vcmp.ge.f32.partialorder %v277_v34, 0.0 }
 0x148   :  { %v308_v38 = vsel %vm288_vm0, %v277_v34, %v300_v36 }
 0x149   :  { %574 = vmatmul.msk.f32.gmra.mxu2 %vm216_vm2, %v308_v38 }
 0x14b   :  { %v279_v39 = vpop.f32.mrf.mxu1 }
 0x14c   :  { %v280_v40 = vadd.f32 %v904_v60, %v279_v39 }
 0x14e   :  { %v301_v41 = vmul.f32 %v909_v61, %v280_v40  ;;  %vm289_vm1 = vcmp.ge.f32.partialorder %v280_v40, 0.0 }
 0x150   :  { %v309_v42 = vsel %vm289_vm1, %v280_v40, %v301_v41 }
 0x151   :  { %575 = vmatmul.msk.f32.gmra.mxu2 %vm216_vm2, %v309_v42 }
 0x19c   :  { %v363_v48 = vpop.f32.mrf.mxu2 }
 0x19d   :  { %v364_v49 = vadd.f32 %v603_v46, %v363_v48 }
 0x19f   :  { %v399_v50 = vmul.f32 %v604_v47, %v364_v49  ;;  %vm387_vm2 = vcmp.ge.f32.partialorder %v364_v49, 0.0 }
 0x1a1   :  { %v407_v51 = vsel %vm387_vm2, %v364_v49, %v399_v50 }
 0x1a2   :  { %415 = vst [vmem:[#allocation9] sm:$0xff] %v407_v51  ;;  %455 = vmatmul.f32.vlgmr.msrb.gmra.mxu0 %v407_v51 }
 0x1a4   :  { %v366_v52 = vpop.f32.mrf.mxu2 }
 0x1a5   :  { %v367_v53 = vadd.f32 %v603_v46, %v366_v52 }
 0x1a7   :  { %vm388_vm3 = vcmp.ge.f32.partialorder %v367_v53, 0.0  ;;  %v400_v54 = vmul.f32 %v604_v47, %v367_v53 }
 0x1a9   :  { %v408_v55 = vsel %vm388_vm3, %v367_v53, %v400_v54 }
 0x1aa   :  { %416 = vst [vmem:[#allocation9 + $0x8] sm:$0xff] %v408_v55  ;;  %458 = vmatmul.f32.vlgmr.msra.gmra.mxu3 %v408_v55 }
 0x1ac   :  { %v369_v56 = vpop.f32.mrf.mxu2 }
 0x1ad   :  { %v370_v57 = vadd.f32 %v603_v46, %v369_v56 }
 0x1af   :  { %vm389_vm4 = vcmp.ge.f32.partialorder %v370_v57, 0.0  ;;  %v401_v58 = vmul.f32 %v604_v47, %v370_v57 }
 0x1b1   :  { %v409_v59 = vsel %vm389_vm4, %v370_v57, %v401_v58 }
 0x1b2   :  { %417 = vst [vmem:[#allocation9 + $0x10] sm:$0xff] %v409_v59  ;;  %461 = vmatmul.f32.gmra.mxu3 %v409_v59 }
 0x1b4   :  { %v372_v60 = vpop.f32.mrf.mxu2 }
 0x1b5   :  { %v373_v61 = vadd.f32 %v603_v46, %v372_v60 }
 0x1b7   :  { %vm390_vm5 = vcmp.ge.f32.partialorder %v373_v61, 0.0  ;;  %v402_v62 = vmul.f32 %v604_v47, %v373_v61 }
 0x1b9   :  { %v410_v63 = vsel %vm390_vm5, %v373_v61, %v402_v62 }
 0x1ba   :  { %418 = vst [vmem:[#allocation9 + $0x18] sm:$0xff] %v410_v63  ;;  %464 = vmatmul.f32.gmra.mxu3 %v410_v63 }
 0x1bc   :  { %v375_v0 = vpop.f32.mrf.mxu2 }
 0x1bd   :  { %v376_v1 = vadd.f32 %v603_v46, %v375_v0 }
 0x1bf   :  { %vm391_vm6 = vcmp.ge.f32.partialorder %v376_v1, 0.0  ;;  %v403_v2 = vmul.f32 %v604_v47, %v376_v1 }
 0x1c1   :  { %v411_v3 = vsel %vm391_vm6, %v376_v1, %v403_v2 }
 0x1c2   :  { %419 = vst [vmem:[#allocation9 + $0x20] sm:$0xff] %v411_v3  ;;  %467 = vmatmul.f32.gmra.mxu3 %v411_v3 }
 0x1c4   :  { %v378_v4 = vpop.f32.mrf.mxu2 }
 0x1c5   :  { %v379_v5 = vadd.f32 %v603_v46, %v378_v4 }
 0x1c7   :  { %vm392_vm7 = vcmp.ge.f32.partialorder %v379_v5, 0.0  ;;  %v404_v6 = vmul.f32 %v604_v47, %v379_v5 }
 0x1c9   :  { %v412_v7 = vsel %vm392_vm7, %v379_v5, %v404_v6 }
 0x1ca   :  { %420 = vst [vmem:[#allocation9 + $0x28] sm:$0xff] %v412_v7  ;;  %470 = vmatmul.f32.gmra.mxu3 %v412_v7 }
 0x1cc   :  { %v381_v8 = vpop.f32.mrf.mxu2 }
 0x1cd   :  { %v382_v9 = vadd.f32 %v603_v46, %v381_v8 }
 0x1cf   :  { %vm393_vm8 = vcmp.ge.f32.partialorder %v382_v9, 0.0  ;;  %v405_v10 = vmul.f32 %v604_v47, %v382_v9 }
 0x1d1   :  { %v413_v11 = vsel %vm393_vm8, %v382_v9, %v405_v10 }
 0x1d2   :  { %421 = vst [vmem:[#allocation9 + $0x30] sm:$0xff] %v413_v11  ;;  %473 = vmatmul.f32.gmra.mxu3 %v413_v11 }
 0x1d4   :  { %v384_v12 = vpop.f32.mrf.mxu2 }
 0x1d5   :  { %v385_v13 = vadd.f32 %v603_v46, %v384_v12 }
 0x1d7   :  { %vm394_vm9 = vcmp.ge.f32.partialorder %v385_v13, 0.0  ;;  %v406_v14 = vmul.f32 %v604_v47, %v385_v13 }
 0x1d9   :  { %v414_v15 = vsel %vm394_vm9, %v385_v13, %v406_v14 }
 0x1da   :  { %422 = vst [vmem:[#allocation9 + $0x38] sm:$0xff] %v414_v15  ;;  %476 = vmatmul.f32.gmra.mxu3 %v414_v15 }
 0x1db   :  { %526 = dma.vmem_to_hbm [thread:$0]  %s519_s10, 1024, %s521_s28, [#allocation5], %s734_s16, %s734_s16, %s735_s17  }
 0x21f   :  { %v456_v17 = vpop.f32.mrf.mxu0 }
 0x220   :  { %v481_v18 = vadd.f32 %v456_v17, %v94_v16 }
 0x222   :  { %v482_v19 = vmax.f32 %v481_v18, 0.0 }
 0x224   :  { %v483_v20 = vmin.f32 %v482_v19, 1.0 }
 0x226   :  { %484 = vst [vmem:[#allocation10] sm:$0xff] %v483_v20 }
 0x22d   :  { %v459_v21 = vpop.f32.mrf.mxu3 }
 0x22e   :  { %v485_v22 = vadd.f32 %v483_v20, %v459_v21 }
 0x230   :  { %v486_v23 = vmax.f32 %v485_v22, 0.0 }
 0x232   :  { %v487_v24 = vmin.f32 %v486_v23, 1.0 }
 0x234   :  { %488 = vst [vmem:[#allocation10 + $0x8] sm:$0xff] %v487_v24 }
 0x235   :  { %v462_v25 = vpop.f32.mrf.mxu3 }
 0x236   :  { %v489_v26 = vadd.f32 %v487_v24, %v462_v25 }
 0x238   :  { %v490_v27 = vmax.f32 %v489_v26, 0.0 }
 0x23a   :  { %v491_v28 = vmin.f32 %v490_v27, 1.0 }
 0x23c   :  { %492 = vst [vmem:[#allocation10 + $0x10] sm:$0xff] %v491_v28 }
 0x23d   :  { %v465_v29 = vpop.f32.mrf.mxu3 }
 0x23e   :  { %v493_v30 = vadd.f32 %v491_v28, %v465_v29 }
 0x240   :  { %v494_v31 = vmax.f32 %v493_v30, 0.0 }
 0x242   :  { %v495_v32 = vmin.f32 %v494_v31, 1.0 }
 0x244   :  { %496 = vst [vmem:[#allocation10 + $0x18] sm:$0xff] %v495_v32 }
 0x245   :  { %v468_v33 = vpop.f32.mrf.mxu3 }
 0x246   :  { %v497_v34 = vadd.f32 %v495_v32, %v468_v33 }
 0x248   :  { %v498_v35 = vmax.f32 %v497_v34, 0.0 }
 0x24a   :  { %v499_v36 = vmin.f32 %v498_v35, 1.0 }
 0x24c   :  { %500 = vst [vmem:[#allocation10 + $0x20] sm:$0xff] %v499_v36 }
 0x24d   :  { %v471_v37 = vpop.f32.mrf.mxu3 }
 0x24e   :  { %v501_v38 = vadd.f32 %v499_v36, %v471_v37 }
 0x250   :  { %v502_v39 = vmax.f32 %v501_v38, 0.0 }
 0x252   :  { %v503_v40 = vmin.f32 %v502_v39, 1.0 }
 0x254   :  { %504 = vst [vmem:[#allocation10 + $0x28] sm:$0xff] %v503_v40 }
 0x255   :  { %v474_v41 = vpop.f32.mrf.mxu3 }
 0x256   :  { %v505_v42 = vadd.f32 %v503_v40, %v474_v41 }
 0x258   :  { %v506_v43 = vmax.f32 %v505_v42, 0.0 }
 0x25a   :  { %v507_v44 = vmin.f32 %v506_v43, 1.0 }
 0x25c   :  { %508 = vst [vmem:[#allocation10 + $0x30] sm:$0xff] %v507_v44 }
 0x25d   :  { %v477_v45 = vpop.f32.mrf.mxu3 }
 0x25e   :  { %v509_v46 = vadd.f32 %v507_v44, %v477_v45 }
 0x260   :  { %v510_v47 = vmax.f32 %v509_v46, 0.0 }
 0x262   :  { %v511_v48 = vmin.f32 %v510_v47, 1.0 }
 0x264   :  { %512 = vst [vmem:[#allocation10 + $0x38] sm:$0xff] %v511_v48 }
 0x265   :  { %539 = dma.vmem_to_hbm [thread:$0]  %s532_s29, 1024, %s534_s2, [#allocation11], %s734_s16, %s734_s16, %s735_s17  }
 0x266   :  { %729 = dma.done.wait [#allocation5], 1024  }
 0x267   :  { %730 = vsyncadd [#allocation5], 4294966272 }
 0x268   :  { %731 = dma.done.wait [#allocation11], 1024  }
 0x269   :  { %732 = vsyncadd [#allocation11], 4294966272 }
 0x26a   :  { %548 = vsyncpa [#allocation4], 1 }
 0x26b   :  { %549 = vsyncpa [#allocation7], 1 }
 0x26c   :  { %550 = vsyncpa [#allocation5], 1 }
 0x26d   :  { %551 = vsyncpa [#allocation11], 1 }

</bundles_post_ra>
